<compile_context>
chip_gen: v6e
topology: v6e:2x2x1
jax: 0.10.0
libtpu: 0.0.40
codegen_flags: <defaults>
</compile_context>

<pallas_src>
import jax
import jax.numpy as jnp
from jax.experimental import pallas as pl
from jax.experimental.pallas import tpu as pltpu

LANES = 128


def _outconv_kernel(x_ref, w_ref, b_ref, o_ref):
    # x_ref: (1, C_in, t_rows, 128)  VMEM  -- dense per-channel (rows, lanes) slabs
    # w_ref: (C_out * C_in,)         SMEM  -- f32 scalar weights
    # b_ref: (C_out,)                SMEM  -- f32 scalar bias
    # o_ref: (1, C_out, t_rows, 128) VMEM  -- lane-dense per-channel stores
    c_in = x_ref.shape[1]
    c_out = o_ref.shape[1]

    # Dense (t_rows, 128) slabs, one per input channel (full vreg utilization).
    xs = [x_ref[0, ci].astype(jnp.float32) for ci in range(c_in)]

    for co in range(c_out):
        # C_in VPU FMAs per vreg with SMEM-scalar weights; f32 accumulation.
        acc = xs[0] * w_ref[co * c_in + 0] + b_ref[co]
        for ci in range(1, c_in):
            acc = acc + xs[ci] * w_ref[co * c_in + ci]
        # Direct per-channel store: plain unmasked vst, no concatenate temp.
        o_ref[0, co] = acc.astype(o_ref.dtype)


def outconv3d(x, weight, bias, *, max_tile_rows=1024):
    """1x1x1 Conv3d forward.

    Args:
      x:      (N, C_in, D, H, W)     -- NCDHW, matching PyTorch.
      weight: (C_out, C_in, 1, 1, 1) -- PyTorch Conv3d weight layout.
      bias:   (C_out,)
    Returns:
      (N, C_out, D, H, W)
    """
    N, C_in, D, H, W = x.shape
    C_out = weight.shape[0]
    S = D * H * W

    # Pad spatial to a lane multiple once (no-op when S % 128 == 0), then view
    # it as a dense (R, 128) slab. Pure reshapes otherwise -- no transposes.
    S_pad = pl.cdiv(S, LANES) * LANES
    x_r = x.reshape(N, C_in, S)
    if S_pad != S:
        x_r = jnp.pad(x_r, ((0, 0), (0, 0), (0, S_pad - S)))
    R = S_pad // LANES
    x_r = x_r.reshape(N, C_in, R, LANES)

    w_flat = weight.reshape(C_out, C_in).astype(jnp.float32).reshape(C_out * C_in)
    b_flat = bias.astype(jnp.float32)

    # Row-tile sizing (true, un-padded footprint thanks to the dense layout):
    #   in  tile: C_in  * t_rows * 128 * 4 B  (2   MiB at t_rows=1024, C_in=4)
    #   out tile: C_out * t_rows * 128 * 4 B  (1.5 MiB at t_rows=1024, C_out=3)
    #   double-buffered total ~7 MiB -> safe under v5e's 16 MiB default scoped
    #   VMEM and leaves ample headroom on v7x's 32 MiB scoped / 64 MiB physical.
    t_rows = min(R, max_tile_rows)
    if t_rows < R:
        t_rows = max(8, (t_rows // 8) * 8)      # keep (8,128)-aligned sub-blocks
    n_r = pl.cdiv(R, t_rows)
    # v7x megacore: guarantee >= 2 grid steps when there is enough work so both
    # TensorCores are busy (N==1, single-tile case).
    if N * n_r < 2 and R >= 16:
        t_rows = ((pl.cdiv(R, 2) + 7) // 8) * 8
        n_r = pl.cdiv(R, t_rows)

    y_r = pl.pallas_call(
        _outconv_kernel,
        out_shape=jax.ShapeDtypeStruct((N, C_out, R, LANES), x.dtype),
        grid_spec=pltpu.PrefetchScalarGridSpec(
            num_scalar_prefetch=0,
            grid=(N, n_r),
            in_specs=[
                pl.BlockSpec((1, C_in, t_rows, LANES), lambda n, r: (n, 0, r, 0)),
                pl.BlockSpec(memory_space=pltpu.MemorySpace.SMEM),  # weights (C_out*C_in scalars)
                pl.BlockSpec(memory_space=pltpu.MemorySpace.SMEM),  # bias (C_out scalars)
            ],
            out_specs=pl.BlockSpec((1, C_out, t_rows, LANES), lambda n, r: (n, 0, r, 0)),
        ),
        compiler_params=pltpu.CompilerParams(
            # Both grid axes are independent -> megacore sharding on v7x.
            dimension_semantics=("parallel", "parallel"),
        ),
    )(x_r, w_flat, b_flat)

    # Undo the padding / slab view (pure reshapes + a cheap slice if padded).
    y = y_r.reshape(N, C_out, S_pad)
    if S_pad != S:
        y = y[:, :, :S]
    return y.reshape(N, C_out, D, H, W)


if __name__ == "__main__":
    # Small shapes consistent with OutConv3D: N=2, C_in=4, C_out=3, D=8, H=16, W=16.
    key = jax.random.PRNGKey(0)
    k_x, k_w, k_b = jax.random.split(key, 3)

    N, C_in, C_out, D, H, W = 2, 4, 3, 8, 16, 16

    x = jax.random.normal(k_x, (N, C_in, D, H, W), dtype=jnp.float32)

    # Deterministic parameter init (matches PyTorch Conv3d default: uniform in
    # [-1/sqrt(fan_in), 1/sqrt(fan_in)] with fan_in = C_in * 1 * 1 * 1).
    bound = 1.0 / jnp.sqrt(jnp.float32(C_in))
    weight = jax.random.uniform(k_w, (C_out, C_in, 1, 1, 1),
                                minval=-bound, maxval=bound, dtype=jnp.float32)
    bias = jax.random.uniform(k_b, (C_out,),
                              minval=-bound, maxval=bound, dtype=jnp.float32)

    y = outconv3d(x, weight, bias)
    jax.block_until_ready(y)

    # Reference check against plain-JAX einsum of the same 1x1x1 conv.
    ref = jnp.einsum("ncdhw,oc->nodhw", x, weight.reshape(C_out, C_in)) \
          + bias.reshape(1, C_out, 1, 1, 1)
    assert y.shape == (N, C_out, D, H, W)
    assert jnp.allclose(y, ref, atol=1e-5, rtol=1e-5)

    print("KERNEL_OK")
</pallas_src>

<mosaic_0001>
module attributes {stable_mosaic.version = 11 : i64} {
  func.func @_outconv_kernel(%arg0: i32, %arg1: i32, %arg2: memref<1x4x16x128xf32, #tpu.memory_space<vmem>>, %arg3: memref<12xf32, #tpu.memory_space<smem>>, %arg4: memref<3xf32, #tpu.memory_space<smem>>, %arg5: memref<1x3x16x128xf32, #tpu.memory_space<vmem>>) attributes {dimension_semantics = [#tpu.dimension_semantics<parallel>, #tpu.dimension_semantics<parallel>], iteration_bounds = array<i64: 2, 1>, scalar_prefetch = 0 : i64, scratch_operands = 0 : i64, tpu.core_type = #tpu.core_type<tc>, window_params = [{transform_indices = @transform_0, window_bounds = array<i64: 1, 4, 16, 128>}, {transform_indices = @transform_1, window_bounds = array<i64: 12>}, {transform_indices = @transform_2, window_bounds = array<i64: 3>}, {transform_indices = @transform_3, window_bounds = array<i64: 1, 3, 16, 128>}]} {
    %c0 = arith.constant 0 : index
    %c0_0 = arith.constant 0 : index
    %c0_1 = arith.constant 0 : index
    %c0_2 = arith.constant 0 : index
    %0 = vector.load %arg2[%c0, %c0_0, %c0_1, %c0_2] : memref<1x4x16x128xf32, #tpu.memory_space<vmem>>, vector<1x1x16x128xf32>
    %1 = vector.shape_cast %0 : vector<1x1x16x128xf32> to vector<16x128xf32>
    %c0_3 = arith.constant 0 : index
    %c1 = arith.constant 1 : index
    %c0_4 = arith.constant 0 : index
    %c0_5 = arith.constant 0 : index
    %2 = vector.load %arg2[%c0_3, %c1, %c0_4, %c0_5] : memref<1x4x16x128xf32, #tpu.memory_space<vmem>>, vector<1x1x16x128xf32>
    %3 = vector.shape_cast %2 : vector<1x1x16x128xf32> to vector<16x128xf32>
    %c0_6 = arith.constant 0 : index
    %c2 = arith.constant 2 : index
    %c0_7 = arith.constant 0 : index
    %c0_8 = arith.constant 0 : index
    %4 = vector.load %arg2[%c0_6, %c2, %c0_7, %c0_8] : memref<1x4x16x128xf32, #tpu.memory_space<vmem>>, vector<1x1x16x128xf32>
    %5 = vector.shape_cast %4 : vector<1x1x16x128xf32> to vector<16x128xf32>
    %c0_9 = arith.constant 0 : index
    %c3 = arith.constant 3 : index
    %c0_10 = arith.constant 0 : index
    %c0_11 = arith.constant 0 : index
    %6 = vector.load %arg2[%c0_9, %c3, %c0_10, %c0_11] : memref<1x4x16x128xf32, #tpu.memory_space<vmem>>, vector<1x1x16x128xf32>
    %7 = vector.shape_cast %6 : vector<1x1x16x128xf32> to vector<16x128xf32>
    %c0_12 = arith.constant 0 : index
    %8 = memref.load %arg3[%c0_12] : memref<12xf32, #tpu.memory_space<smem>>
    %9 = vector.broadcast %8 : f32 to vector<16x128xf32>
    %10 = arith.mulf %1, %9 : vector<16x128xf32>
    %c0_13 = arith.constant 0 : index
    %11 = memref.load %arg4[%c0_13] : memref<3xf32, #tpu.memory_space<smem>>
    %12 = vector.broadcast %11 : f32 to vector<16x128xf32>
    %13 = arith.addf %10, %12 : vector<16x128xf32>
    %c1_14 = arith.constant 1 : index
    %14 = memref.load %arg3[%c1_14] : memref<12xf32, #tpu.memory_space<smem>>
    %15 = vector.broadcast %14 : f32 to vector<16x128xf32>
    %16 = arith.mulf %3, %15 : vector<16x128xf32>
    %17 = arith.addf %13, %16 : vector<16x128xf32>
    %c2_15 = arith.constant 2 : index
    %18 = memref.load %arg3[%c2_15] : memref<12xf32, #tpu.memory_space<smem>>
    %19 = vector.broadcast %18 : f32 to vector<16x128xf32>
    %20 = arith.mulf %5, %19 : vector<16x128xf32>
    %21 = arith.addf %17, %20 : vector<16x128xf32>
    %c3_16 = arith.constant 3 : index
    %22 = memref.load %arg3[%c3_16] : memref<12xf32, #tpu.memory_space<smem>>
    %23 = vector.broadcast %22 : f32 to vector<16x128xf32>
    %24 = arith.mulf %7, %23 : vector<16x128xf32>
    %25 = arith.addf %21, %24 : vector<16x128xf32>
    %c0_17 = arith.constant 0 : index
    %c0_18 = arith.constant 0 : index
    %c0_19 = arith.constant 0 : index
    %c0_20 = arith.constant 0 : index
    %26 = vector.load %arg5[%c0_17, %c0_18, %c0_19, %c0_20] : memref<1x3x16x128xf32, #tpu.memory_space<vmem>>, vector<1x1x16x128xf32>
    %27 = vector.shape_cast %26 : vector<1x1x16x128xf32> to vector<16x128xf32>
    %28 = vector.shape_cast %25 : vector<16x128xf32> to vector<1x1x16x128xf32>
    tpu.vector_store %arg5[%c0_17, %c0_18, %c0_19, %c0_20], %28 {strides = array<i32>} : memref<1x3x16x128xf32, #tpu.memory_space<vmem>>, vector<1x1x16x128xf32>,
    %c4 = arith.constant 4 : index
    %29 = memref.load %arg3[%c4] : memref<12xf32, #tpu.memory_space<smem>>
    %30 = vector.broadcast %29 : f32 to vector<16x128xf32>
    %31 = arith.mulf %1, %30 : vector<16x128xf32>
    %c1_21 = arith.constant 1 : index
    %32 = memref.load %arg4[%c1_21] : memref<3xf32, #tpu.memory_space<smem>>
    %33 = vector.broadcast %32 : f32 to vector<16x128xf32>
    %34 = arith.addf %31, %33 : vector<16x128xf32>
    %c5 = arith.constant 5 : index
    %35 = memref.load %arg3[%c5] : memref<12xf32, #tpu.memory_space<smem>>
    %36 = vector.broadcast %35 : f32 to vector<16x128xf32>
    %37 = arith.mulf %3, %36 : vector<16x128xf32>
    %38 = arith.addf %34, %37 : vector<16x128xf32>
    %c6 = arith.constant 6 : index
    %39 = memref.load %arg3[%c6] : memref<12xf32, #tpu.memory_space<smem>>
    %40 = vector.broadcast %39 : f32 to vector<16x128xf32>
    %41 = arith.mulf %5, %40 : vector<16x128xf32>
    %42 = arith.addf %38, %41 : vector<16x128xf32>
    %c7 = arith.constant 7 : index
    %43 = memref.load %arg3[%c7] : memref<12xf32, #tpu.memory_space<smem>>
    %44 = vector.broadcast %43 : f32 to vector<16x128xf32>
    %45 = arith.mulf %7, %44 : vector<16x128xf32>
    %46 = arith.addf %42, %45 : vector<16x128xf32>
    %c0_22 = arith.constant 0 : index
    %c1_23 = arith.constant 1 : index
    %c0_24 = arith.constant 0 : index
    %c0_25 = arith.constant 0 : index
    %47 = vector.load %arg5[%c0_22, %c1_23, %c0_24, %c0_25] : memref<1x3x16x128xf32, #tpu.memory_space<vmem>>, vector<1x1x16x128xf32>
    %48 = vector.shape_cast %47 : vector<1x1x16x128xf32> to vector<16x128xf32>
    %49 = vector.shape_cast %46 : vector<16x128xf32> to vector<1x1x16x128xf32>
    tpu.vector_store %arg5[%c0_22, %c1_23, %c0_24, %c0_25], %49 {strides = array<i32>} : memref<1x3x16x128xf32, #tpu.memory_space<vmem>>, vector<1x1x16x128xf32>,
    %c8 = arith.constant 8 : index
    %50 = memref.load %arg3[%c8] : memref<12xf32, #tpu.memory_space<smem>>
    %51 = vector.broadcast %50 : f32 to vector<16x128xf32>
    %52 = arith.mulf %1, %51 : vector<16x128xf32>
    %c2_26 = arith.constant 2 : index
    %53 = memref.load %arg4[%c2_26] : memref<3xf32, #tpu.memory_space<smem>>
    %54 = vector.broadcast %53 : f32 to vector<16x128xf32>
    %55 = arith.addf %52, %54 : vector<16x128xf32>
    %c9 = arith.constant 9 : index
    %56 = memref.load %arg3[%c9] : memref<12xf32, #tpu.memory_space<smem>>
    %57 = vector.broadcast %56 : f32 to vector<16x128xf32>
    %58 = arith.mulf %3, %57 : vector<16x128xf32>
    %59 = arith.addf %55, %58 : vector<16x128xf32>
    %c10 = arith.constant 10 : index
    %60 = memref.load %arg3[%c10] : memref<12xf32, #tpu.memory_space<smem>>
    %61 = vector.broadcast %60 : f32 to vector<16x128xf32>
    %62 = arith.mulf %5, %61 : vector<16x128xf32>
    %63 = arith.addf %59, %62 : vector<16x128xf32>
    %c11 = arith.constant 11 : index
    %64 = memref.load %arg3[%c11] : memref<12xf32, #tpu.memory_space<smem>>
    %65 = vector.broadcast %64 : f32 to vector<16x128xf32>
    %66 = arith.mulf %7, %65 : vector<16x128xf32>
    %67 = arith.addf %63, %66 : vector<16x128xf32>
    %c0_27 = arith.constant 0 : index
    %c2_28 = arith.constant 2 : index
    %c0_29 = arith.constant 0 : index
    %c0_30 = arith.constant 0 : index
    %68 = vector.load %arg5[%c0_27, %c2_28, %c0_29, %c0_30] : memref<1x3x16x128xf32, #tpu.memory_space<vmem>>, vector<1x1x16x128xf32>
    %69 = vector.shape_cast %68 : vector<1x1x16x128xf32> to vector<16x128xf32>
    %70 = vector.shape_cast %67 : vector<16x128xf32> to vector<1x1x16x128xf32>
    tpu.vector_store %arg5[%c0_27, %c2_28, %c0_29, %c0_30], %70 {strides = array<i32>} : memref<1x3x16x128xf32, #tpu.memory_space<vmem>>, vector<1x1x16x128xf32>,
    return
  }
  func.func @transform_0(%arg0: i32, %arg1: i32) -> (i32, i32, i32, i32) {
    %c0_i32 = arith.constant 0 : i32
    %c0_i32_0 = arith.constant 0 : i32
    %c0_i32_1 = arith.constant 0 : i32
    return %arg0, %c0_i32, %arg1, %c0_i32_0 : i32, i32, i32, i32
  }
  func.func @transform_1(%arg0: i32, %arg1: i32) -> i32 {
    %c0_i32 = arith.constant 0 : i32
    %c0_i32_0 = arith.constant 0 : i32
    return %c0_i32 : i32
  }
  func.func @transform_2(%arg0: i32, %arg1: i32) -> i32 {
    %c0_i32 = arith.constant 0 : i32
    %c0_i32_0 = arith.constant 0 : i32
    return %c0_i32 : i32
  }
  func.func @transform_3(%arg0: i32, %arg1: i32) -> (i32, i32, i32, i32) {
    %c0_i32 = arith.constant 0 : i32
    %c0_i32_0 = arith.constant 0 : i32
    %c0_i32_1 = arith.constant 0 : i32
    return %arg0, %c0_i32, %arg1, %c0_i32_0 : i32, i32, i32, i32
  }
}

</mosaic_0001>

<bundles_post_ra>
// kernel: tpu_custom_call.1
= control target key start
LH: loop header
LB: loop body
LE: loop exit
PB: predicated region body
PF: predicated region fallthrough
CT: control target
= control target key end

     0   :  { %s1021_s0 = inlined_call_operand.hbm [shape: f32[2,4,16,128], index: 0, kind: input, shape index: {}]   ;;  %s1022_s1 = inlined_call_operand.vmem [shape: f32[12], index: 1, kind: input, shape index: {}]   ;;  %s1023_s2 = inlined_call_operand.vmem [shape: f32[3], index: 2, kind: input, shape index: {}]   ;;  %s1024_s3 = inlined_call_operand.hbm [shape: f32[2,3,16,128], index: 3, kind: output, shape index: {}]  }
   0x1   :  { %1031 = sst [smem:[#allocation14_spill]] %s1022_s1 }
   0x2   :  { %8 = vsyncpa [#allocation3], 0 }
   0x3   :  { %10 = vsyncpa [#allocation3 + $0x1], 0 }
   0x4   :  { %11 = vsyncpa [#allocation5], 0 }
   0x5   :  { %12 = vsyncpa [#allocation8], 0 }
   0x6   :  { %13 = vsyncpa [#allocation4], 0 }
   0x7   :  { %15 = vsyncpa [#allocation4 + $0x1], 0  ;;  %s763_s12 = smov 0   ;;  %s765_s13 = smov 0  }
   0x8   :  { %s767_s14 = smov 0   ;;  %s769_s15 = smov 0  }
   0x9   :  { %s771_s16 = smov 0   ;;  %s773_s17 = smov 0  }
   0xa LB: > { %s458_s18 = sadd.s32 4294967295, %s733_s17   ;;  %s459_s19 = sadd.s32 4294967294, %s733_s17   ;;  %s733_s17 = sphi %s773_s17, %s21_s17   ;;  %s729_s16 = sphi %s771_s16, %s1052_s16   ;;  %s725_s15 = sphi %s769_s15, %s1051_s15   ;;  %s721_s14 = sphi %s767_s14, %s1050_s14   ;;  %s717_s13 = sphi %s765_s13, %s1049_s13   ;;  %s713_s12 = sphi %s763_s12, %s1048_s12  }
   0xb   : > { %s42_s20 = sadd.s32 1, %s721_s14  ;;  %p49_p0 = scmp.ne.s32.totalorder %s721_s14, %s717_s13 }
   0xc   : > { %p50_p1 = scmp.eq.s32.totalorder %s733_s17, 0  ;;  %p55_p2 = scmp.ne.s32.totalorder %s717_s13, %s713_s12 }
   0xd   : > { %p801_p3 = scmp.eq.s32.totalorder %s458_s18, 0  ;;  %p123_p4 = scmp.eq.s32.totalorder %s458_s18, 1 }
   0xe   : > { %p805_p5 = por %p50_p1, %p49_p0  ;;  %p129_p6 = scmp.eq.s32.totalorder %s459_s19, 1 }
   0xf   : > { %s1032_s21 = scalar_select %p801_p3, 1, 0 }
  0x10   : > { %p811_p7 = por %p801_p3, %p55_p2  ;;  %p815_p8 = por %p123_p4, %p49_p0 }
  0x11   : > { %p819_p9 = por %p129_p6, %p55_p2  ;;  %p460_p10 = scmp.ge.s32.totalorder %s733_s17, 1 }
  0x12   : > { %s1034_s23 = scalar_select %p811_p7, 1, 0 }
  0x13   : > { %s1035_s24 = scalar_select %p815_p8, 1, 0 }
  0x14   : > { %s1036_s25 = scalar_select %p819_p9, 1, 0 }
  0x15   : > { %p136_p11 = scmp.lt.s32.totalorder %s733_s17, 3  ;;  %s1037_s1 = sld [smem:[#allocation14_spill]] }
  0x16   : > { %p529_p0 = scmp.lt.s32.totalorder %s733_s17, 2  ;;  %s160_s5 = sshll.u32 %s1023_s2, 4  ;;  %s161_s5 = int_to_ptr.vmem [resolvable:$true] %s160_s5 }
  0x17   : > { %p828_p12 = pnand %p460_p10, %p136_p11 }
  0x18   : > { %p841_p2 = pnand %p529_p0, %p805_p5 }
  0x19   : > { %s1038_s29 = scalar_select %p828_p12, 1, 0 }
  0x1a   : > { %p512_p1 = pneg %p828_p12 }
  0x1b   : > { %s149_s28 = sshll.u32 %s1037_s1, 4  ;;  %s150_s28 = int_to_ptr.vmem [resolvable:$true] %s149_s28 }
  0x1c   : > { %s1039_s6 = scalar_select %p841_p2, 1, 0 }
  0x1d   : > { %p847_p4 = pnand %p512_p1, %p801_p3  ;;  %s587_s8 = scalar_lea.vmem %s150_s28, 16 }
  0x1e   : > { %p588_p6 = scmp.ne.s32.totalorder %s150_s28, %s587_s8  ;;  %p595_p9 = scmp.lt.s32.totalorder %s150_s28, %s150_s28 }
  0x1f   : > { %p589_p10 = pneg %p847_p4  ;;  %p596_p8 = scmp.lt.s32.totalorder %s587_s8, %s587_s8 }
  0x21   : > { %p590_p11 = pnand %p589_p10, %p588_p6  ;;  %p597_p7 = por %p596_p8, %p595_p9 }
  0x23   : > { %p591_p13 = pneg %p590_p11 }
  0x25   : > { %p598_p5 = pnand %p597_p7, %p591_p13 }
  0x27   : > { %601 = shalt.err (!%p598_p5)
}
  0x28   : > { %s735_s9 = smov [#allocation6]   ;;  %s602_s10 = scalar_lea.vmem %s161_s5, 16 }
  0x29   : > { %515 = dma.vmem_to_smem (!%p847_p4), %s150_s28, 16, %s735_s9, [#allocation5]  }
  0x2a   : > { %p603_p0 = scmp.ne.s32.totalorder %s161_s5, %s602_s10  ;;  %p610_p12 = scmp.lt.s32.totalorder %s161_s5, %s161_s5 }
  0x2b   : > { %p611_p2 = scmp.lt.s32.totalorder %s602_s10, %s602_s10 }
  0x2c   : > { %p605_p1 = pnand %p603_p0, %p589_p10 }
  0x2d   : > { %p612_p6 = por %p611_p2, %p610_p12 }
  0x2e   : > { %p606_p3 = pneg %p605_p1 }
  0x30   : > { %p613_p11 = pnand %p612_p6, %p606_p3 }
  0x32   : > { %616 = shalt.err (!%p613_p11)
}
  0x33   : > { %s736_s11 = smov [#allocation7]   ;;  %s33_s18 = sadd.s32 1, %s729_s16 }
  0x34   : > { %518 = dma.vmem_to_smem (!%p847_p4), %s161_s5, 16, %s736_s11, [#allocation8]  }
  0x35   : > { %s171_s19 = sand.u32 1, %s721_s14   ;;  %p35_p7 = scmp.ge.s32.totalorder %s33_s18, 2 }
  0x36   : > { %s464_s22 = sshll.u32 %s171_s19, 6  ;;  %s497_s26 = sshll.u32 %s729_s16, 10 }
  0x37   : > { %s1054_s18 = smov (%p35_p7, %s33_s18), 0  ;;  %s183_s30 = scalar_lea.hbm %s1021_s0, %s497_s26 }
  0x38   : > { %s37_s4 = ssub.s32 %s729_s16, %s1054_s18  ;;  %s175_s7 = scalar_lea.vmem [#allocation2], %s464_s22 }
  0x39   : > { %s184_s8 = sshll.u32 %s175_s7, 4  ;;  %p40_p3 = scmp.eq.s32.totalorder %s37_s4, 0  ;;  %s185_s8 = int_to_ptr.vmem [resolvable:$true] %s184_s8 }
  0x3a   : > { %s172_s5 = scalar_lea.sflag [#allocation3], %s171_s19  ;;  %p1041_p8 = scmp.ne.s32.totalorder %s1039_s6, 0 }
  0x3b   : > { %s870_s9 = scalar_select %p40_p3, %s721_s14, %s42_s20  }
  0x3c   : > { %p619_p9 = pneg %p1041_p8  ;;  %s630_s10 = scalar_lea.vmem %s185_s8, 1024 }
  0x3d   : > { %p631_p12 = scmp.ne.s32.totalorder %s185_s8, %s630_s10  ;;  %s737_s11 = smov [#allocation2]  }
  0x3e   : > { %s635_s1 = sshll.u32 %s737_s11, 4  ;;  %s636_s1 = int_to_ptr.vmem [resolvable:$false] %s635_s1 }
  0x3f   : > { %p633_p13 = pnand %p631_p12, %p619_p9  ;;  %s637_s27 = scalar_lea.vmem %s636_s1, 2048 }
  0x40   : > { %p638_p4 = scmp.lt.s32.totalorder %s185_s8, %s636_s1  ;;  %p639_p10 = scmp.lt.s32.totalorder %s637_s27, %s630_s10 }
  0x41   : > { %p634_p2 = pneg %p633_p13 }
  0x42   : > { %p640_p5 = por %p639_p10, %p638_p4 }
  0x44   : > { %p641_p0 = pnand %p640_p5, %p634_p2 }
  0x46   : > { %644 = shalt.err (!%p641_p0)
}
  0x47   : > { %s738_s22 = smov 128   ;;  %s739_s20 = smov 8  }
  0x48   : > { %522 = dma.hbm_to_vmem [thread:$0]  (!%p1041_p8), %s183_s30, 1024, %s185_s8, %s172_s5, %s738_s22, %s738_s22, %s739_s20  }
  0x49   : > { %p1042_p1 = scmp.ne.s32.totalorder %s1038_s29, 0 }
  0x4a   : > { %s879_s19 = sand.u32 (!%p1042_p1), 1, %s717_s13   ;;  %p1043_p6 = scmp.ne.s32.totalorder (!%p1042_p1), %s1034_s23, 0 }
  0x4b   : > { %196 = sbr.rel (%p1042_p1) target bundleno = 131 (0x83), region = 32  ;;  %s468_s26 = sshll.u32 (!%p1042_p1), %s879_s19, 6 }
  0x4c   : > { %s199_s1 = scalar_lea.sflag (!%p1042_p1), [#allocation3], %s879_s19  ;;  %s202_s28 = scalar_lea.vmem (!%p1042_p1), [#allocation2], %s468_s26 }
  0x50   : > { %696 = dma.done.wait (%p1043_p6), %s199_s1, 1024  }
  0x51   : > { %698 = vsyncadd (%p1043_p6), %s199_s1, 4294966272  ;;  %p1044_p11 = scmp.ne.s32.totalorder %s1032_s21, 0 }
  0x53   : > { %700 = dma.done.wait (%p1044_p11), [#allocation5], 16  }
  0x54   : > { %702 = vsyncadd (%p1044_p11), [#allocation5], 4294967280 }
  0x55   : > { %704 = dma.done.wait (%p1044_p11), [#allocation8], 16  }
  0x56   : > { %706 = vsyncadd (%p1044_p11), [#allocation8], 4294967280 }
  0x57   : > { %215 = sfence }
  0x58   : > { %s247_s29 = sld [smem:[#allocation6]]  ;;  %v895_v0 = vld [vmem:[%s202_s28] sm:$0xff]  ;;  %v897_v1 = vld [vmem:[%s202_s28 + $0x8] sm:$0xff]  ;;  %v471_v2 = vld [vmem:[%s202_s28 + $0x10] sm:$0xff]  ;;  %s498_s11 = smul.u32 48, %s879_s19 }
  0x59   : > { %s251_s6 = sld [smem:[#allocation7]]  ;;  %v903_v4 = vld [vmem:[%s202_s28 + $0x20] sm:$0xff]  ;;  %v472_v7 = vld [vmem:[%s202_s28 + $0x18] sm:$0xff]  ;;  %v906_v8 = vld [vmem:[%s202_s28 + $0x28] sm:$0xff]  ;;  %p1045_p3 = scmp.ne.s32.totalorder %s1035_s24, 0 }
  0x5a   : > { %s477_s30 = sld [smem:[#allocation6 + $0x1]]  ;;  %v911_v10 = vld [vmem:[%s202_s28 + $0x30] sm:$0xff]  ;;  %v913_v12 = vld [vmem:[%s202_s28 + $0x38] sm:$0xff]  ;;  %s945_s28 = scalar_lea.vmem [#allocation9], %s498_s11 }
  0x5b   : > { %s478_s4 = sld [smem:[#allocation6 + $0x2]] }
  0x5c   : > { %s479_s23 = sld [smem:[#allocation6 + $0x3]] }
  0x5d   : > { %s899_s7 = sld [smem:[#allocation6 + $0x4]] }
  0x5e   : > { %v248_v3 = vstv %s247_s29  ;;  %s901_s8 = sld [smem:[#allocation7 + $0x1]]  ;;  %s349_s29 = sshll.u32 %s945_s28, 4  ;;  %s966_s29 = int_to_ptr.vmem [resolvable:$true] %s349_s29 }
  0x5f   : > { %v249_v5 = vmul.f32 %v248_v3, %v895_v0  ;;  %v252_v6 = vstv %s251_s6  ;;  %v250_v9 = vmul.f32 %v248_v3, %v897_v1  ;;  %s909_s21 = sld [smem:[#allocation6 + $0x5]]  ;;  %s499_s6 = smul.u32 768, %s725_s15 }
  0x60   : > { %v256_v11 = vstv %s477_s30  ;;  %s915_s5 = sld [smem:[#allocation6 + $0x6]]  ;;  %s740_s15 = smov [#allocation9]  }
  0x61   : > { %v253_v13 = vadd.f32 %v252_v6, %v249_v5  ;;  %v257_v14 = vmul.f32 %v471_v2, %v256_v11  ;;  %v262_v15 = vstv %s478_s4  ;;  %v254_v16 = vadd.f32 %v252_v6, %v250_v9  ;;  %s917_s10 = sld [smem:[#allocation6 + $0x7]] }
  0x62   : > { %v263_v17 = vmul.f32 %v903_v4, %v262_v15  ;;  %v268_v18 = vstv %s479_s23  ;;  %v258_v19 = vmul.f32 %v472_v7, %v256_v11  ;;  %v264_v20 = vmul.f32 %v906_v8, %v262_v15  ;;  %s922_s27 = sld [smem:[#allocation6 + $0x8]]  ;;  %s971_s23 = scalar_lea.hbm %s1024_s3, %s499_s6 }
  0x63   : > { %v259_v21 = vadd.f32 %v257_v14, %v253_v13  ;;  %v269_v22 = vmul.f32 %v911_v10, %v268_v18  ;;  %v270_v23 = vmul.f32 %v913_v12, %v268_v18  ;;  %v276_v24 = vstv %s899_s7  ;;  %s927_s22 = sld [smem:[#allocation7 + $0x2]]  ;;  %s334_s7 = scalar_lea.sflag [#allocation4], %s879_s19 }
  0x64   : > { %v260_v25 = vadd.f32 %v258_v19, %v254_v16  ;;  %v277_v26 = vmul.f32 %v276_v24, %v895_v0  ;;  %v280_v27 = vstv %s901_s8  ;;  %v278_v28 = vmul.f32 %v276_v24, %v897_v1  ;;  %s932_s20 = sld [smem:[#allocation6 + $0x9]]  ;;  %s645_s8 = scalar_lea.vmem %s966_s29, 768 }
  0x65   : > { %v265_v29 = vadd.f32 %v263_v17, %v259_v21  ;;  %v284_v30 = vstv %s909_s21  ;;  %s935_s26 = sld [smem:[#allocation6 + $0xa]]  ;;  %p646_p7 = scmp.ne.s32.totalorder %s966_s29, %s645_s8 }
  0x66   : > { %v266_v31 = vadd.f32 %v264_v20, %v260_v25  ;;  %v281_v32 = vadd.f32 %v280_v27, %v277_v26  ;;  %v285_v33 = vmul.f32 %v471_v2, %v284_v30  ;;  %v290_v34 = vstv %s915_s5  ;;  %s938_s1 = sld [smem:[#allocation6 + $0xb]]  ;;  %s649_s21 = sshll.u32 %s740_s15, 4  ;;  %s650_s21 = int_to_ptr.vmem [resolvable:$false] %s649_s21 }
  0x67   : > { %v271_v35 = vadd.f32 %v269_v22, %v265_v29  ;;  %v291_v36 = vmul.f32 %v903_v4, %v290_v34  ;;  %v296_v37 = vstv %s917_s10  ;;  %v282_v38 = vadd.f32 %v280_v27, %v278_v28  ;;  %p647_p8 = pnand %p646_p7, %p1045_p3  ;;  %s651_s5 = scalar_lea.vmem %s650_s21, 1536 }
  0x68   : > { %v272_v39 = vadd.f32 %v270_v23, %v266_v31  ;;  %v287_v40 = vadd.f32 %v285_v33, %v281_v32  ;;  %v297_v41 = vmul.f32 %v911_v10, %v296_v37  ;;  %v286_v42 = vmul.f32 %v472_v7, %v284_v30  ;;  %p652_p12 = scmp.lt.s32.totalorder %s966_s29, %s650_s21  ;;  %p653_p13 = scmp.lt.s32.totalorder %s651_s5, %s645_s8 }
  0x69   : > { %273 = vst [vmem:[%s945_s28] sm:$0xff] %v271_v35  ;;  %v292_v43 = vmul.f32 %v906_v8, %v290_v34  ;;  %v298_v44 = vmul.f32 %v913_v12, %v296_v37  ;;  %v305_v45 = vstv %s922_s27  ;;  %v309_v46 = vstv %s927_s22  ;;  %p648_p9 = pneg %p647_p8 }
  0x6a   : > { %274 = vst [vmem:[%s945_s28 + $0x8] sm:$0xff] %v272_v39  ;;  %v293_v47 = vadd.f32 %v291_v36, %v287_v40  ;;  %v288_v48 = vadd.f32 %v286_v42, %v282_v38  ;;  %v306_v49 = vmul.f32 %v305_v45, %v895_v0  ;;  %v313_v50 = vstv %s932_s20  ;;  %p654_p2 = por %p653_p13, %p652_p12 }
  0x6b   : > { %v314_v51 = vmul.f32 %v471_v2, %v313_v50  ;;  %v319_v52 = vstv %s935_s26  ;;  %v307_v53 = vmul.f32 %v305_v45, %v897_v1  ;;  %v315_v54 = vmul.f32 %v472_v7, %v313_v50 }
  0x6c   : > { %v299_v55 = vadd.f32 %v297_v41, %v293_v47  ;;  %v294_v56 = vadd.f32 %v292_v43, %v288_v48  ;;  %v310_v57 = vadd.f32 %v309_v46, %v306_v49  ;;  %v320_v58 = vmul.f32 %v903_v4, %v319_v52  ;;  %p655_p4 = pnand %p654_p2, %p648_p9 }
  0x6d   : > { %v325_v59 = vstv %s938_s1  ;;  %v311_v60 = vadd.f32 %v309_v46, %v307_v53  ;;  %v321_v61 = vmul.f32 %v906_v8, %v319_v52 }
  0x6e   : > { %485 = vst [vmem:[%s945_s28 + $0x10] sm:$0xff] %v299_v55  ;;  %v300_v62 = vadd.f32 %v298_v44, %v294_v56  ;;  %v316_v63 = vadd.f32 %v314_v51, %v310_v57  ;;  %v326_v0 = vmul.f32 %v911_v10, %v325_v59  ;;  %v327_v2 = vmul.f32 %v913_v12, %v325_v59 }
  0x6f   : > { %v317_v1 = vadd.f32 %v315_v54, %v311_v60 }
  0x70   : > { %486 = vst [vmem:[%s945_s28 + $0x18] sm:$0xff] %v300_v62  ;;  %v322_v3 = vadd.f32 %v320_v58, %v316_v63 }
  0x71   : > { %v323_v4 = vadd.f32 %v321_v61, %v317_v1 }
  0x72   : > { %v328_v5 = vadd.f32 %v326_v0, %v322_v3 }
  0x73   : > { %v329_v6 = vadd.f32 %v327_v2, %v323_v4 }
  0x74   : > { %492 = vst [vmem:[%s945_s28 + $0x20] sm:$0xff] %v328_v5 }
  0x75   : > { %493 = vst [vmem:[%s945_s28 + $0x28] sm:$0xff] %v329_v6 }
  0x76   : > { %658 = shalt.err (!%p655_p4)
}
  0x77   : > { %s659_s10 = scalar_lea.hbm %s971_s23, 768  ;;  %s663_s22 = scalar_lea.hbm %s1024_s3, 1536 }
  0x78   : > { %p660_p10 = scmp.ne.s32.totalorder %s971_s23, %s659_s10  ;;  %p664_p1 = scmp.lt.s32.totalorder %s971_s23, %s1024_s3 }
  0x79   : > { %p665_p6 = scmp.lt.s32.totalorder %s663_s22, %s659_s10 }
  0x7a   : > { %p661_p5 = pnand %p660_p10, %p1045_p3 }
  0x7b   : > { %p666_p11 = por %p665_p6, %p664_p1 }
  0x7c   : > { %p662_p0 = pneg %p661_p5 }
  0x7e   : > { %p667_p7 = pnand %p666_p11, %p662_p0 }
  0x80   : > { %670 = shalt.err (!%p667_p7)
}
  0x81   : > { %s741_s1 = smov 128   ;;  %s742_s28 = smov 8  }
  0x82   : > { %510 = dma.vmem_to_hbm [thread:$0]  (%p1045_p3), %s966_s29, 768, %s971_s23, %s334_s7, %s741_s1, %s741_s1, %s742_s28  }
  0x83 PF: > { %s364_s6 = sand.u32 1, %s713_s12   ;;  %p1046_p8 = scmp.ne.s32.totalorder %s1036_s25, 0 }
  0x84   : > { %p1047_p9 = scmp.ge.s32.totalorder %s733_s17, 2  ;;  %s365_s30 = scalar_lea.sflag [#allocation4], %s364_s6 }
  0x86   : > { %p524_p12 = pnand %p1047_p9, %p1046_p8 }
  0x88   : > { %p525_p13 = pneg %p524_p12 }
  0x8a   : > { %708 = dma.done.wait (%p525_p13), %s365_s30, 768  }
  0x8b   : > { %710 = vsyncadd (%p525_p13), %s365_s30, 4294966528  ;;  %s21_s17 = sadd.s32 1, %s733_s17   ;;  %s1048_s12 = smov %s717_s13 }
  0x8c   : > { %p18_p2 = scmp.ge.s32.totalorder %s21_s17, 4   ;;  %s1049_s13 = smov %s721_s14 }
  0x8d   : > { %s1050_s14 = smov %s870_s9  ;;  %s1051_s15 = smov %s729_s16 }
  0x8e   : > { %s1052_s16 = smov %s1054_s18  ;;  %20 = sbr.rel (!%p18_p2) target bundleno = 10 (0xa), region = 91 }
  0x93   :  { %370 = vsyncpa [#allocation3], 1 }
  0x94   :  { %372 = vsyncpa [#allocation3 + $0x1], 1 }
  0x95   :  { %373 = vsyncpa [#allocation4], 1 }
  0x96   :  { %375 = vsyncpa [#allocation4 + $0x1], 1 }
  0x97   :  { %376 = vsyncpa [#allocation5], 1 }
  0x98   :  { %378 = vsyncpa [#allocation5 + $0x1], 1 }
  0x99   :  { %379 = vsyncpa [#allocation8], 1 }

</bundles_post_ra>
